<compile_context>
chip_gen: v6e
topology: v6e:2x2x1
jax: 0.10.0
libtpu: 0.0.40
codegen_flags: <defaults>
</compile_context>

<pallas_src>
import jax
import jax.numpy as jnp
from jax.experimental import pallas as pl
from jax.experimental.pallas import tpu as pltpu


def _make_kernel(n_b):
    """Kernel over one (n_b, C_in, t_hw) x-block and one (t_co, C_in) weight."""
    def kernel(x_ref, w_ref, bias_ref, o_ref):
        # x_ref:    (n_b, C_in, t_hw)   spatial tile of n_b batch elements
        # w_ref:    (t_co, C_in)        BN-scale-folded weight tile
        # bias_ref: (t_co, 1)           folded BN bias (f32)
        # o_ref:    (n_b, t_co, t_hw)
        w = w_ref[...]
        b = bias_ref[...]
        for i in range(n_b):                      # small static unroll
            acc = jnp.dot(w, x_ref[i], preferred_element_type=jnp.float32)
            o_ref[i] = jnp.maximum(acc + b, 0.0).astype(o_ref.dtype)
    return kernel


def _pad_to(a, m):
    return ((a + m - 1) // m) * m


def _plan_tiles(N, C_in, C_out, HW, io_bytes):
    """Pick (n_b, t_co, t_hw, vmem_limit_bytes) from a generation-aware budget.

    Budgets every resident buffer (x tile, out tile, weight, bias), each
    double-buffered and padded to the (sublane, 128-lane) layout.
    """
    try:
        vmem_cap = int(pltpu.get_tpu_info().vmem_capacity_bytes)
    except Exception:
        vmem_cap = 64 * 1024 * 1024          # v7x per-TC (smallest current gen)

    # ~70% of physical VMEM, capped: v7x 64MiB -> ~45MiB, v5e/v6e 128MiB -> ~90MiB.
    budget = min(int(0.70 * vmem_cap), 96 * 1024 * 1024)

    # Tile C_out only for very wide layers; keeps weight/output blocks bounded
    # without shrinking the lane-dense HW tile.
    t_co = C_out if C_out <= 1024 else 512

    # Tile-size-independent footprint: weight + bias, double-buffered, padded.
    w_block = _pad_to(t_co, 16) * _pad_to(C_in, 128) * io_bytes
    b_block = _pad_to(t_co, 16) * 128 * 4    # bias is kept in f32
    fixed = 2 * (w_block + b_block)

    # Batch blocking for small feature maps: amortize per-grid-step overhead.
    hw_cols = _pad_to(HW, 128)
    n_b = 1
    if hw_cols <= 2048:
        n_b = max(1, min(N, 8, 2048 // hw_cols))
        while n_b > 1 and N % n_b != 0:      # prefer no masked tail batch block
            n_b -= 1

    # Bytes per lane column of the double-buffered x + out tiles.
    per_col = 2 * n_b * (_pad_to(C_in, 16) + _pad_to(t_co, 16)) * io_bytes
    avail = max(budget - fixed, per_col * 128)
    max_cols = avail // per_col

    if max_cols >= HW:
        t_hw = HW                            # full-extent block, no masking
    else:
        t_cap = max(128, (max_cols // 128) * 128)
        t_hw = t_cap
        # Prefer a 128-aligned divisor of HW near the cap -> no masked tail tile.
        for cand in range(t_cap, 127, -128):
            if HW % cand == 0:
                if 2 * cand >= t_cap:
                    t_hw = cand
                break

    planned = (fixed
               + 2 * n_b * _pad_to(C_in, 16) * _pad_to(t_hw, 128) * io_bytes
               + 2 * n_b * _pad_to(t_co, 16) * _pad_to(t_hw, 128) * io_bytes)
    vmem_limit = min(int(0.90 * vmem_cap),
                     max(32 * 1024 * 1024, int(1.25 * planned) + (2 << 20)))
    return n_b, t_co, t_hw, vmem_limit


def conv1x1_bn_relu(x_nchw, conv_w, conv_b, gamma, beta, running_mean,
                    running_var, eps=1e-6, io_dtype=None):
    """1x1 conv + eval-mode BN (folded) + ReLU.

    x_nchw: (N, C_in, H, W); conv_w: (C_out, C_in, 1, 1); conv_b: (C_out,).
    io_dtype: optional activation/weight/output dtype (e.g. jnp.bfloat16) for
              ~2x bandwidth on this HBM-bound kernel; accumulation stays f32.
    """
    N, C_in, H, W = x_nchw.shape
    C_out = conv_w.shape[0]
    HW = H * W
    io_dtype = jnp.dtype(io_dtype) if io_dtype is not None else x_nchw.dtype

    # Fold eval-mode BatchNorm into the weight and a per-channel f32 bias.
    inv_std = 1.0 / jnp.sqrt(running_var.astype(jnp.float32) + eps)
    scale = gamma.astype(jnp.float32) * inv_std                       # (C_out,)
    w = conv_w[:, :, 0, 0].astype(jnp.float32) * scale[:, None]       # (C_out, C_in)
    bias = (conv_b.astype(jnp.float32) - running_mean.astype(jnp.float32)) \
        * scale + beta.astype(jnp.float32)                            # (C_out,)
    w = w.astype(io_dtype)
    bias2d = bias.reshape(C_out, 1)                                   # f32 epilogue

    # NCHW -> (N, C_in, H*W): contiguous reshape, no data movement.
    x3 = x_nchw.reshape(N, C_in, HW).astype(io_dtype)

    io_bytes = jnp.dtype(io_dtype).itemsize
    n_b, t_co, t_hw, vmem_limit = _plan_tiles(N, C_in, C_out, HW, io_bytes)

    grid = (pl.cdiv(N, n_b), pl.cdiv(C_out, t_co), pl.cdiv(HW, t_hw))

    flops = 2 * N * HW * C_in * C_out
    bytes_accessed = (N * C_in * HW * io_bytes          # x
                      + C_out * C_in * io_bytes         # weight
                      + C_out * 4                       # bias
                      + N * C_out * HW * io_bytes)      # out

    out3 = pl.pallas_call(
        _make_kernel(n_b),
        out_shape=jax.ShapeDtypeStruct((N, C_out, HW), io_dtype),
        grid=grid,
        in_specs=[
            pl.BlockSpec((n_b, C_in, t_hw), lambda n, co, t: (n, 0, t)),
            pl.BlockSpec((t_co, C_in), lambda n, co, t: (co, 0)),
            pl.BlockSpec((t_co, 1), lambda n, co, t: (co, 0)),
        ],
        out_specs=pl.BlockSpec((n_b, t_co, t_hw), lambda n, co, t: (n, co, t)),
        compiler_params=pltpu.CompilerParams(
            dimension_semantics=("parallel", "parallel", "parallel"),
            vmem_limit_bytes=int(vmem_limit)),
        cost_estimate=pl.CostEstimate(flops=flops, transcendentals=0,
                                      bytes_accessed=bytes_accessed),
    )(x3, w, bias2d)

    # (N, C_out, H*W) -> NCHW: contiguous reshape, no data movement.
    return out3.reshape(N, C_out, H, W)


def _reference(x_nchw, conv_w, conv_b, gamma, beta, running_mean, running_var,
               eps=1e-6):
    # Pure-JAX reference (matches the PyTorch module, eval-mode BN, eps=1e-6).
    y = jnp.einsum('nchw,oc->nohw', x_nchw, conv_w[:, :, 0, 0]) \
        + conv_b[None, :, None, None]
    inv_std = 1.0 / jnp.sqrt(running_var + eps)
    y = (y - running_mean[None, :, None, None]) * (gamma * inv_std)[None, :, None, None] \
        + beta[None, :, None, None]
    return jnp.maximum(y, 0.0)


def _make_case(key, N, C_in, C_out, H, W):
    k_x, k_w, k_b, k_g, k_be, k_m, k_v = jax.random.split(key, 7)
    x = jax.random.normal(k_x, (N, C_in, H, W), dtype=jnp.float32)
    conv_w = jax.random.normal(k_w, (C_out, C_in, 1, 1), dtype=jnp.float32) * 0.1
    conv_b = jax.random.normal(k_b, (C_out,), dtype=jnp.float32) * 0.1
    gamma = 1.0 + 0.1 * jax.random.normal(k_g, (C_out,), dtype=jnp.float32)
    beta = 0.1 * jax.random.normal(k_be, (C_out,), dtype=jnp.float32)
    running_mean = 0.05 * jax.random.normal(k_m, (C_out,), dtype=jnp.float32)
    running_var = 1.0 + 0.1 * jax.random.uniform(k_v, (C_out,), dtype=jnp.float32)
    return x, conv_w, conv_b, gamma, beta, running_mean, running_var


if __name__ == "__main__":
    key = jax.random.PRNGKey(0)
    k1, k2 = jax.random.split(key, 2)

    # Case 1: module-consistent small shape (batch blocking path, n_b=2).
    args1 = _make_case(k1, N=2, C_in=4, C_out=8, H=16, W=16)
    out = jax.block_until_ready(conv1x1_bn_relu(*args1, eps=1e-6))
    ref = _reference(*args1, eps=1e-6)
    assert out.shape == (2, 8, 16, 16)
    assert jnp.allclose(out, ref, atol=1e-4, rtol=1e-4), "f32 mismatch (case 1)"

    # Case 1, bf16 I/O path (HBM-bound kernel: ~2x bandwidth); f32 accumulation.
    out_bf16 = jax.block_until_ready(
        conv1x1_bn_relu(*args1, eps=1e-6, io_dtype=jnp.bfloat16))
    assert jnp.allclose(out_bf16.astype(jnp.float32), ref, atol=5e-2, rtol=5e-2), \
        "bf16 mismatch (case 1)"

    # Case 2: non-multiple-of-8 channels, non-multiple-of-128 HW (full-extent blocks).
    args2 = _make_case(k2, N=3, C_in=6, C_out=10, H=20, W=20)
    out2 = jax.block_until_ready(conv1x1_bn_relu(*args2, eps=1e-6))
    ref2 = _reference(*args2, eps=1e-6)
    assert out2.shape == (3, 10, 20, 20)
    assert jnp.allclose(out2, ref2, atol=1e-4, rtol=1e-4), "f32 mismatch (case 2)"

    print("KERNEL_OK")
</pallas_src>

<mosaic_0001>
module attributes {stable_mosaic.version = 11 : i64} {
  func.func @kernel(%arg0: i32, %arg1: i32, %arg2: i32, %arg3: memref<2x4x256xf32, #tpu.memory_space<vmem>>, %arg4: memref<8x4xf32, #tpu.memory_space<vmem>>, %arg5: memref<8x1xf32, #tpu.memory_space<vmem>>, %arg6: memref<2x8x256xf32, #tpu.memory_space<vmem>>) attributes {dimension_semantics = [#tpu.dimension_semantics<parallel>, #tpu.dimension_semantics<parallel>, #tpu.dimension_semantics<parallel>], iteration_bounds = array<i64: 1, 1, 1>, scalar_prefetch = 0 : i64, scratch_operands = 0 : i64, tpu.core_type = #tpu.core_type<tc>, window_params = [{transform_indices = @transform_0, window_bounds = array<i64: 2, 4, 256>}, {transform_indices = @transform_1, window_bounds = array<i64: 8, 4>}, {transform_indices = @transform_2, window_bounds = array<i64: 8, 1>}, {transform_indices = @transform_3, window_bounds = array<i64: 2, 8, 256>}]} {
    %c0 = arith.constant 0 : index
    %c0_0 = arith.constant 0 : index
    %0 = vector.load %arg4[%c0, %c0_0] : memref<8x4xf32, #tpu.memory_space<vmem>>, vector<8x4xf32>
    %c0_1 = arith.constant 0 : index
    %c0_2 = arith.constant 0 : index
    %1 = vector.load %arg5[%c0_1, %c0_2] : memref<8x1xf32, #tpu.memory_space<vmem>>, vector<8x1xf32>
    %c0_3 = arith.constant 0 : index
    %c0_4 = arith.constant 0 : index
    %c0_5 = arith.constant 0 : index
    %2 = vector.load %arg3[%c0_3, %c0_4, %c0_5] : memref<2x4x256xf32, #tpu.memory_space<vmem>>, vector<1x4x256xf32>
    %3 = vector.shape_cast %2 : vector<1x4x256xf32> to vector<4x256xf32>
    %cst = arith.constant dense<0.000000e+00> : vector<8x256xf32>
    %4 = tpu.matmul %0, %3, %cst {dimension_numbers = #tpu.dot_dimension_numbers<[1], [0], [0], [1], [0, 0, 1, 1], [], []>} : vector<8x4xf32>, vector<4x256xf32>, vector<8x256xf32> -> vector<8x256xf32>
    %5 = vector.broadcast %1 : vector<8x1xf32> to vector<8x256xf32>
    %6 = arith.addf %4, %5 : vector<8x256xf32>
    %cst_6 = arith.constant 0.000000e+00 : f32
    %7 = vector.broadcast %cst_6 : f32 to vector<8x256xf32>
    %8 = arith.maximumf %6, %7 : vector<8x256xf32>
    %c0_7 = arith.constant 0 : index
    %c0_8 = arith.constant 0 : index
    %c0_9 = arith.constant 0 : index
    %9 = vector.load %arg6[%c0_7, %c0_8, %c0_9] : memref<2x8x256xf32, #tpu.memory_space<vmem>>, vector<1x8x256xf32>
    %10 = vector.shape_cast %9 : vector<1x8x256xf32> to vector<8x256xf32>
    %11 = vector.shape_cast %8 : vector<8x256xf32> to vector<1x8x256xf32>
    tpu.vector_store %arg6[%c0_7, %c0_8, %c0_9], %11 {strides = array<i32>} : memref<2x8x256xf32, #tpu.memory_space<vmem>>, vector<1x8x256xf32>,
    %c1 = arith.constant 1 : index
    %c0_10 = arith.constant 0 : index
    %c0_11 = arith.constant 0 : index
    %12 = vector.load %arg3[%c1, %c0_10, %c0_11] : memref<2x4x256xf32, #tpu.memory_space<vmem>>, vector<1x4x256xf32>
    %13 = vector.shape_cast %12 : vector<1x4x256xf32> to vector<4x256xf32>
    %cst_12 = arith.constant dense<0.000000e+00> : vector<8x256xf32>
    %14 = tpu.matmul %0, %13, %cst_12 {dimension_numbers = #tpu.dot_dimension_numbers<[1], [0], [0], [1], [0, 0, 1, 1], [], []>} : vector<8x4xf32>, vector<4x256xf32>, vector<8x256xf32> -> vector<8x256xf32>
    %15 = vector.broadcast %1 : vector<8x1xf32> to vector<8x256xf32>
    %16 = arith.addf %14, %15 : vector<8x256xf32>
    %cst_13 = arith.constant 0.000000e+00 : f32
    %17 = vector.broadcast %cst_13 : f32 to vector<8x256xf32>
    %18 = arith.maximumf %16, %17 : vector<8x256xf32>
    %c1_14 = arith.constant 1 : index
    %c0_15 = arith.constant 0 : index
    %c0_16 = arith.constant 0 : index
    %19 = vector.load %arg6[%c1_14, %c0_15, %c0_16] : memref<2x8x256xf32, #tpu.memory_space<vmem>>, vector<1x8x256xf32>
    %20 = vector.shape_cast %19 : vector<1x8x256xf32> to vector<8x256xf32>
    %21 = vector.shape_cast %18 : vector<8x256xf32> to vector<1x8x256xf32>
    tpu.vector_store %arg6[%c1_14, %c0_15, %c0_16], %21 {strides = array<i32>} : memref<2x8x256xf32, #tpu.memory_space<vmem>>, vector<1x8x256xf32>,
    return
  }
  func.func @transform_0(%arg0: i32, %arg1: i32, %arg2: i32) -> (i32, i32, i32) {
    %c0_i32 = arith.constant 0 : i32
    %c0_i32_0 = arith.constant 0 : i32
    return %arg0, %c0_i32, %arg2 : i32, i32, i32
  }
  func.func @transform_1(%arg0: i32, %arg1: i32, %arg2: i32) -> (i32, i32) {
    %c0_i32 = arith.constant 0 : i32
    %c0_i32_0 = arith.constant 0 : i32
    return %arg1, %c0_i32 : i32, i32
  }
  func.func @transform_2(%arg0: i32, %arg1: i32, %arg2: i32) -> (i32, i32) {
    %c0_i32 = arith.constant 0 : i32
    %c0_i32_0 = arith.constant 0 : i32
    return %arg1, %c0_i32 : i32, i32
  }
  func.func @transform_3(%arg0: i32, %arg1: i32, %arg2: i32) -> (i32, i32, i32) {
    %c0_i32 = arith.constant 0 : i32
    return %arg0, %arg1, %arg2 : i32, i32, i32
  }
}

</mosaic_0001>

<bundles_post_ra>
// kernel: tpu_custom_call.1
= control target key start
LH: loop header
LB: loop body
LE: loop exit
PB: predicated region body
PF: predicated region fallthrough
CT: control target
= control target key end

     0   :  { %vm29_vm0 = vcmask 1043456   ;;  %v246_v4 = vmov 0.0   ;;  %s290_s0 = inlined_call_operand.vmem [shape: f32[2,4,256], index: 0, kind: input, shape index: {}]   ;;  %s291_s1 = inlined_call_operand.vmem [shape: f32[8,4], index: 1, kind: input, shape index: {}]   ;;  %s292_s2 = inlined_call_operand.vmem [shape: f32[8,1], index: 2, kind: input, shape index: {}]   ;;  %s293_s3 = inlined_call_operand.hbm [shape: f32[2,8,256], index: 3, kind: output, shape index: {}]  }
   0x1   :  { %v17_v0 = vld [vmem:[%s290_s0] sm:$0xff]  ;;  %v212_v1 = vld [vmem:[%s290_s0 + $0x8] sm:$0xff]  ;;  %98 = vmatprep.mubr.f32.mxu0 %v246_v4  ;;  %181 = vmatprep.mubr.f32.mxu1 %v246_v4 }
   0x2   :  { %v24_v2 = vcombine.high %v17_v0, %v17_v0  ;;  %v112_v3 = vcombine.high %v212_v1, %v212_v1 }
   0x3   :  { %8 = vsyncpa [#allocation3], 0  ;;  %v15_v5 = vld [vmem:[%s291_s1] sm:$0xff]  ;;  %vm25_vm1 = vcmask 31744   ;;  %v247_v6 = vmov 0   ;;  %s248_s0 = smov [#allocation2]  }
   0x4   :  { %221 = vset.pattern.permute.xlu0 %v247_v6  ;;  %209 = vmatprep.subr.msk.mxu0 %vm29_vm0, %v24_v2  ;;  %v16_v7 = vld [vmem:[%s292_s2] sm:$0xff]  ;;  %s198_s1 = sshll.u32 %s248_s0, 4  ;;  %s199_s1 = int_to_ptr.vmem [resolvable:$true] %s198_s1 }
   0x5   :  { %213 = vmatprep.subr.msk.mxu1 %vm29_vm0, %v112_v3  ;;  %210 = vmatpush1.msk.msra.mxu0 %vm29_vm0, %v17_v0  ;;  %s224_s2 = scalar_lea.vmem %s199_s1, 512  ;;  %p229_p1 = scmp.lt.s32.totalorder %s199_s1, %s199_s1 }
   0x6   :  { %214 = vmatpush1.msk.msra.mxu1 %vm29_vm0, %v212_v1  ;;  %211 = vmatmul.mubr.msk.f32.vlgmr.msra.gmra.mxu0 %vm25_vm1, %v15_v5  ;;  %p225_p0 = scmp.ne.s32.totalorder %s199_s1, %s224_s2  ;;  %p230_p2 = scmp.lt.s32.totalorder %s224_s2, %s224_s2 }
   0x7   :  { %215 = vmatmul.mubr.msk.f32.vlgmr.msra.gmra.mxu1 %vm25_vm1, %v15_v5  ;;  %20 = vperm.xlu0 %221, %v16_v7  }
   0x8   :  { %p231_p3 = por %p230_p2, %p229_p1 }
   0xa   :  { %p232_p4 = pnand %p231_p3, %p225_p0 }
  0x82   :  { %v21_v8 = vpop.permute.xlu0 %20 }
  0xc6   :  { %v100_v9 = vpop.f32.mrf.mxu0 }
  0xc7   :  { %v183_v10 = vpop.f32.mrf.mxu1  ;;  %v101_v11 = vadd.f32 %v100_v9, %v21_v8 }
  0xc8   :  { %v184_v12 = vadd.f32 %v183_v10, %v21_v8  ;;  %v102_v13 = vpop.f32.mrf.mxu0 }
  0xc9   :  { %v185_v14 = vpop.f32.mrf.mxu1  ;;  %v105_v15 = vmax.f32 %v101_v11, 0.0  ;;  %v103_v17 = vadd.f32 %v102_v13, %v21_v8 }
  0xca   :  { %v188_v16 = vmax.f32 %v184_v12, 0.0  ;;  %v186_v18 = vadd.f32 %v185_v14, %v21_v8 }
  0xcb   :  { %107 = vst [vmem:[#allocation2] sm:$0xff] %v105_v15  ;;  %v106_v19 = vmax.f32 %v103_v17, 0.0 }
  0xcc   :  { %191 = vst [vmem:[#allocation2 + $0x10] sm:$0xff] %v188_v16  ;;  %v189_v20 = vmax.f32 %v186_v18, 0.0 }
  0xcd   :  { %108 = vst [vmem:[#allocation2 + $0x8] sm:$0xff] %v106_v19 }
  0xce   :  { %192 = vst [vmem:[#allocation2 + $0x18] sm:$0xff] %v189_v20 }
  0xcf   :  { %235 = shalt.err (!%p232_p4)
}
  0xd0   :  { %s249_s20 = smov 256   ;;  %s250_s21 = smov 16  }
  0xd1   :  { %204 = dma.vmem_to_hbm [thread:$0]  %s199_s1, 512, %s293_s3, [#allocation3], %s249_s20, %s249_s20, %s250_s21  }
  0xd2   :  { %244 = dma.done.wait [#allocation3], 512  }
  0xd3   :  { %245 = vsyncadd [#allocation3], 4294966784 }
  0xd4   :  { %208 = vsyncpa [#allocation3], 1 }

</bundles_post_ra>
